<compile_context>
chip_gen: v5e
topology: v5e:2x2
jax: 0.10.0
libtpu: 0.0.40
codegen_flags: <defaults>
</compile_context>

<pallas_src>
import functools

import jax
import jax.numpy as jnp
from jax import lax
from jax.experimental import pallas as pl
from jax.experimental.pallas import tpu as pltpu


def _prompt_assemble_kernel(n_ctx, emb_ref, ctx_pos_pad_ref, ctx_neg_pad_ref,
                            pos_out_ref, neg_out_ref):
    """Assemble positive & negative prompt embeddings for a block of classes.

    emb_ref         : (TC, S, D)  token_embedding rows for TC classes
    ctx_pos_pad_ref : (S, D)      positive ctx in rows [1, 1+n_ctx), zeros elsewhere
    ctx_neg_pad_ref : (S, D)      negative ctx in rows [1, 1+n_ctx), zeros elsewhere
    pos_out_ref     : (TC, S, D)
    neg_out_ref     : (TC, S, D)

    out[:, s, :] = ctx_pad[s, :]   if 1 <= s < 1+n_ctx
                 = emb[:, s, :]    otherwise   (prefix/SOS, class name, EOS, pad)
    """
    emb = emb_ref[...]                                   # (TC, S, D)
    _, s, d = emb.shape

    # Per-row mask over the sequence axis; pure VPU compare, no cross-sublane work.
    row = lax.broadcasted_iota(jnp.int32, (s, d), 0)     # (S, D)
    is_ctx = jnp.logical_and(row >= 1, row < 1 + n_ctx)[None, :, :]   # (1, S, D)

    # Implicit broadcast of the (1, S, D) ctx slab over the class axis; one
    # full-block, lane-dense, unmasked store per output.
    pos_out_ref[...] = jnp.where(is_ctx, ctx_pos_pad_ref[...][None, :, :], emb)
    neg_out_ref[...] = jnp.where(is_ctx, ctx_neg_pad_ref[...][None, :, :], emb)


def _plan_blocks(n_cls, seq_len, d, itemsize):
    """Pick classes-per-block (TC) and a matching scoped-VMEM limit.

    Per grid step: 1 input block + 2 output blocks, double-buffered -> ~6x block
    bytes, plus the two resident (S, D) ctx slabs and internal scratch.
    """
    per_class = seq_len * d * itemsize

    try:
        phys_vmem = int(pltpu.get_tpu_info().vmem_capacity_bytes)
    except Exception:
        phys_vmem = 64 << 20  # conservative: v7x has 64 MiB per TensorCore

    # ~60% of physical VMEM for pipelined buffers, capped at 64 MiB
    # (v5e/v6e have 128 MiB physical; v7x has 64 MiB).
    budget = min(int(phys_vmem * 0.6), 64 << 20)
    tc = max(1, min(n_cls, budget // (6 * per_class)))

    # Target >= 4 grid steps when the total payload is large enough to amortize
    # the ~0.35 us/step overhead -- keeps HBM reads and writes streaming
    # concurrently instead of serializing a single giant step.
    if n_cls * per_class >= (4 << 20):
        tc = min(tc, pl.cdiv(n_cls, 4))
    tc = max(1, tc)

    # Prefer an even number of grid steps: v7x shards the "parallel" class axis
    # across 2 TensorCores, and an odd step count idles one core for a block.
    steps = pl.cdiv(n_cls, tc)
    if steps > 1 and steps % 2 == 1:
        tc = max(1, pl.cdiv(n_cls, steps + 1))

    ctx_bytes = 2 * seq_len * d * itemsize
    vmem_limit = 6 * tc * per_class + 4 * ctx_bytes + (4 << 20)   # + scratch headroom
    vmem_limit = int(min(max(vmem_limit, 16 << 20), int(phys_vmem * 0.9)))
    return int(tc), vmem_limit


def prompt_learner_forward(embedding, ctx_pos, ctx_neg, *, classes_per_block=None):
    """Pallas implementation of PromptLearner.forward (neg_prompt_wcls=True).

    embedding : (n_cls, seq_len, D)  token_embedding(tokenized_prompts)
                (prefix = embedding[:, :1, :], suffix = embedding[:, 1+n_ctx:, :])
    ctx_pos   : (n_ctx, D)  generic positive context (CSC=False)
    ctx_neg   : (n_ctx, D)  generic negative context
    Returns (prompts_pos, prompts_neg), each (n_cls, seq_len, D) in embedding.dtype.
    """
    n_cls, seq_len, d = embedding.shape
    n_ctx = ctx_pos.shape[0]
    dtype = embedding.dtype
    itemsize = jnp.dtype(dtype).itemsize

    if classes_per_block is None:
        tc, vmem_limit = _plan_blocks(n_cls, seq_len, d, itemsize)
    else:
        tc = int(classes_per_block)
        vmem_limit = int(max(16 << 20, 6 * tc * seq_len * d * itemsize + (4 << 20)))

    # One-time, tiny (S, D) padded ctx slabs, pre-cast to the embedding dtype so
    # the in-kernel select never promotes the whole block.
    ctx_pos_pad = jnp.zeros((seq_len, d), dtype).at[1:1 + n_ctx, :].set(
        ctx_pos.astype(dtype))
    ctx_neg_pad = jnp.zeros((seq_len, d), dtype).at[1:1 + n_ctx, :].set(
        ctx_neg.astype(dtype))

    grid = (pl.cdiv(n_cls, tc),)
    kernel = functools.partial(_prompt_assemble_kernel, n_ctx)

    out_shape = (
        jax.ShapeDtypeStruct((n_cls, seq_len, d), dtype),
        jax.ShapeDtypeStruct((n_cls, seq_len, d), dtype),
    )

    grid_spec = pltpu.PrefetchScalarGridSpec(
        num_scalar_prefetch=0,
        grid=grid,
        in_specs=[
            pl.BlockSpec((tc, seq_len, d), lambda i: (i, 0, 0)),    # embedding block
            pl.BlockSpec((seq_len, d), lambda i: (0, 0)),           # ctx_pos_pad (resident)
            pl.BlockSpec((seq_len, d), lambda i: (0, 0)),           # ctx_neg_pad (resident)
        ],
        out_specs=[
            pl.BlockSpec((tc, seq_len, d), lambda i: (i, 0, 0)),    # prompts_pos
            pl.BlockSpec((tc, seq_len, d), lambda i: (i, 0, 0)),    # prompts_neg
        ],
    )

    # Pure data movement: 1 read of embedding + 2 output writes (+ tiny ctx reads).
    bytes_accessed = 3 * n_cls * seq_len * d * itemsize + 2 * seq_len * d * itemsize
    cost = pl.CostEstimate(flops=0, transcendentals=0, bytes_accessed=bytes_accessed)

    return pl.pallas_call(
        kernel,
        out_shape=out_shape,
        grid_spec=grid_spec,
        cost_estimate=cost,
        compiler_params=pltpu.CompilerParams(
            dimension_semantics=("parallel",),
            vmem_limit_bytes=vmem_limit),
    )(embedding, ctx_pos_pad, ctx_neg_pad)


def reference_forward(embedding, ctx_pos, ctx_neg, n_ctx):
    n_cls = embedding.shape[0]
    dtype = embedding.dtype
    prefix = embedding[:, :1, :]
    suffix = embedding[:, 1 + n_ctx:, :]
    ctx_pos_b = jnp.broadcast_to(ctx_pos.astype(dtype)[None], (n_cls,) + ctx_pos.shape)
    ctx_neg_b = jnp.broadcast_to(ctx_neg.astype(dtype)[None], (n_cls,) + ctx_neg.shape)
    p_pos = jnp.concatenate([prefix, ctx_pos_b, suffix], axis=1)
    p_neg = jnp.concatenate([prefix, ctx_neg_b, suffix], axis=1)
    return p_pos, p_neg


if __name__ == "__main__":
    key = jax.random.PRNGKey(0)
    k_ctx_p, k_ctx_n, k_emb1, k_emb2 = jax.random.split(key, 4)

    # ---- Test 1: f32, auto-planned blocks (module-consistent small shapes) ----
    n_cls, n_ctx, seq_len, ctx_dim = 8, 4, 16, 128
    ctx_pos = (0.02 * jax.random.normal(k_ctx_p, (n_ctx, ctx_dim))).astype(jnp.float32)
    ctx_neg = (0.02 * jax.random.normal(k_ctx_n, (n_ctx, ctx_dim))).astype(jnp.float32)
    embedding = jax.random.normal(k_emb1, (n_cls, seq_len, ctx_dim)).astype(jnp.float32)

    p_pos, p_neg = prompt_learner_forward(embedding, ctx_pos, ctx_neg)
    jax.block_until_ready((p_pos, p_neg))
    r_pos, r_neg = reference_forward(embedding, ctx_pos, ctx_neg, n_ctx)
    assert p_pos.shape == (n_cls, seq_len, ctx_dim)
    assert p_neg.shape == (n_cls, seq_len, ctx_dim)
    assert jnp.array_equal(p_pos, r_pos)
    assert jnp.array_equal(p_neg, r_neg)

    # ---- Test 2: bf16 embeddings with f32 ctx params, partial last block ----
    n_cls2 = 10
    embedding2 = jax.random.normal(
        k_emb2, (n_cls2, seq_len, ctx_dim)).astype(jnp.bfloat16)
    p_pos2, p_neg2 = prompt_learner_forward(
        embedding2, ctx_pos, ctx_neg, classes_per_block=4)   # grid of 3, last block partial
    jax.block_until_ready((p_pos2, p_neg2))
    r_pos2, r_neg2 = reference_forward(embedding2, ctx_pos, ctx_neg, n_ctx)
    assert p_pos2.dtype == jnp.bfloat16 and p_neg2.dtype == jnp.bfloat16
    assert jnp.array_equal(p_pos2, r_pos2)
    assert jnp.array_equal(p_neg2, r_neg2)

    print("KERNEL_OK")
</pallas_src>

<mosaic_0001>
module attributes {stable_mosaic.version = 11 : i64} {
  func.func @_prompt_assemble_kernel(%arg0: i32, %arg1: memref<8x16x128xf32, #tpu.memory_space<vmem>>, %arg2: memref<16x128xf32, #tpu.memory_space<vmem>>, %arg3: memref<16x128xf32, #tpu.memory_space<vmem>>, %arg4: memref<8x16x128xf32, #tpu.memory_space<vmem>>, %arg5: memref<8x16x128xf32, #tpu.memory_space<vmem>>) attributes {dimension_semantics = [#tpu.dimension_semantics<parallel>], iteration_bounds = array<i64: 1>, scalar_prefetch = 0 : i64, scratch_operands = 0 : i64, tpu.core_type = #tpu.core_type<tc>, window_params = [{transform_indices = @transform_0, window_bounds = array<i64: 8, 16, 128>}, {pipeline_mode = #tpu.pipeline_mode<synchronous>, transform_indices = @transform_1, window_bounds = array<i64: 16, 128>}, {pipeline_mode = #tpu.pipeline_mode<synchronous>, transform_indices = @transform_2, window_bounds = array<i64: 16, 128>}, {transform_indices = @transform_3, window_bounds = array<i64: 8, 16, 128>}, {transform_indices = @transform_4, window_bounds = array<i64: 8, 16, 128>}]} {
    %c0 = arith.constant 0 : index
    %c0_0 = arith.constant 0 : index
    %c0_1 = arith.constant 0 : index
    %0 = vector.load %arg1[%c0, %c0_0, %c0_1] : memref<8x16x128xf32, #tpu.memory_space<vmem>>, vector<8x16x128xf32>
    %1 = tpu.iota {dimensions = array<i32: 0>} : vector<16x128xi32>
    %c1_i32 = arith.constant 1 : i32
    %2 = vector.broadcast %c1_i32 : i32 to vector<16x128xi32>
    %3 = arith.cmpi sge, %1, %2 : vector<16x128xi32>
    %c5_i32 = arith.constant 5 : i32
    %4 = vector.broadcast %c5_i32 : i32 to vector<16x128xi32>
    %5 = arith.cmpi slt, %1, %4 : vector<16x128xi32>
    %6 = arith.andi %3, %5 : vector<16x128xi1>
    %7 = vector.shape_cast %6 : vector<16x128xi1> to vector<1x16x128xi1>
    %c0_2 = arith.constant 0 : index
    %c0_3 = arith.constant 0 : index
    %8 = vector.load %arg2[%c0_2, %c0_3] : memref<16x128xf32, #tpu.memory_space<vmem>>, vector<16x128xf32>
    %9 = vector.shape_cast %8 : vector<16x128xf32> to vector<1x16x128xf32>
    %10 = vector.shape_cast %7 : vector<1x16x128xi1> to vector<1x16x128xi1>
    %11 = vector.broadcast %10 : vector<1x16x128xi1> to vector<8x16x128xi1>
    %12 = vector.shape_cast %9 : vector<1x16x128xf32> to vector<1x16x128xf32>
    %13 = vector.broadcast %12 : vector<1x16x128xf32> to vector<8x16x128xf32>
    %14 = arith.select %11, %13, %0 : vector<8x16x128xi1>, vector<8x16x128xf32>
    %c0_4 = arith.constant 0 : index
    %c0_5 = arith.constant 0 : index
    %c0_6 = arith.constant 0 : index
    %15 = vector.load %arg4[%c0_4, %c0_5, %c0_6] : memref<8x16x128xf32, #tpu.memory_space<vmem>>, vector<8x16x128xf32>
    tpu.vector_store %arg4[%c0_4, %c0_5, %c0_6], %14 {strides = array<i32>} : memref<8x16x128xf32, #tpu.memory_space<vmem>>, vector<8x16x128xf32>,
    %c0_7 = arith.constant 0 : index
    %c0_8 = arith.constant 0 : index
    %16 = vector.load %arg3[%c0_7, %c0_8] : memref<16x128xf32, #tpu.memory_space<vmem>>, vector<16x128xf32>
    %17 = vector.shape_cast %16 : vector<16x128xf32> to vector<1x16x128xf32>
    %18 = vector.shape_cast %7 : vector<1x16x128xi1> to vector<1x16x128xi1>
    %19 = vector.broadcast %18 : vector<1x16x128xi1> to vector<8x16x128xi1>
    %20 = vector.shape_cast %17 : vector<1x16x128xf32> to vector<1x16x128xf32>
    %21 = vector.broadcast %20 : vector<1x16x128xf32> to vector<8x16x128xf32>
    %22 = arith.select %19, %21, %0 : vector<8x16x128xi1>, vector<8x16x128xf32>
    %c0_9 = arith.constant 0 : index
    %c0_10 = arith.constant 0 : index
    %c0_11 = arith.constant 0 : index
    %23 = vector.load %arg5[%c0_9, %c0_10, %c0_11] : memref<8x16x128xf32, #tpu.memory_space<vmem>>, vector<8x16x128xf32>
    tpu.vector_store %arg5[%c0_9, %c0_10, %c0_11], %22 {strides = array<i32>} : memref<8x16x128xf32, #tpu.memory_space<vmem>>, vector<8x16x128xf32>,
    return
  }
  func.func @transform_0(%arg0: i32) -> (i32, i32, i32) {
    %c0_i32 = arith.constant 0 : i32
    %c0_i32_0 = arith.constant 0 : i32
    %c0_i32_1 = arith.constant 0 : i32
    return %arg0, %c0_i32, %c0_i32_0 : i32, i32, i32
  }
  func.func @transform_1(%arg0: i32) -> (i32, i32) {
    %c0_i32 = arith.constant 0 : i32
    %c0_i32_0 = arith.constant 0 : i32
    %c0_i32_1 = arith.constant 0 : i32
    return %c0_i32, %c0_i32_0 : i32, i32
  }
  func.func @transform_2(%arg0: i32) -> (i32, i32) {
    %c0_i32 = arith.constant 0 : i32
    %c0_i32_0 = arith.constant 0 : i32
    %c0_i32_1 = arith.constant 0 : i32
    return %c0_i32, %c0_i32_0 : i32, i32
  }
  func.func @transform_3(%arg0: i32) -> (i32, i32, i32) {
    %c0_i32 = arith.constant 0 : i32
    %c0_i32_0 = arith.constant 0 : i32
    %c0_i32_1 = arith.constant 0 : i32
    return %arg0, %c0_i32, %c0_i32_0 : i32, i32, i32
  }
  func.func @transform_4(%arg0: i32) -> (i32, i32, i32) {
    %c0_i32 = arith.constant 0 : i32
    %c0_i32_0 = arith.constant 0 : i32
    %c0_i32_1 = arith.constant 0 : i32
    return %arg0, %c0_i32, %c0_i32_0 : i32, i32, i32
  }
}

</mosaic_0001>

<bundles_post_ra>
// kernel: tpu_custom_call.1
= control target key start
LH: loop header
LB: loop body
LE: loop exit
PB: predicated region body
PF: predicated region fallthrough
CT: control target
= control target key end

     0   :  { %10 = vsyncpa [#allocation3], 0  ;;  %s433_s0 = inlined_call_operand.hbm [shape: f32[8,16,128], index: 0, kind: input, shape index: {}]   ;;  %s434_s1 = inlined_call_operand.hbm [shape: f32[16,128], index: 1, kind: input, shape index: {}]   ;;  %s435_s2 = inlined_call_operand.hbm [shape: f32[16,128], index: 2, kind: input, shape index: {}]   ;;  %s436_s3 = inlined_call_operand.hbm [shape: f32[8,16,128], index: 3, kind: output, shape index: {0}]   ;;  %s437_s4 = inlined_call_operand.hbm [shape: f32[8,16,128], index: 4, kind: output, shape index: {1}]  }
   0x1   :  { %11 = vsyncpa [#allocation6], 0 }
   0x2   :  { %12 = vsyncpa [#allocation4], 0 }
   0x3   :  { %13 = vsyncpa [#allocation10], 0  ;;  %s31_s17 = sshll.u32 %s434_s1, 4  ;;  %s335_s18 = smov [#allocation5]   ;;  %s32_s17 = int_to_ptr.hbm [resolvable:$true] %s31_s17 }
   0x4   :  { %s33_s19 = sshll.u32 %s335_s18, 4  ;;  %s18_s22 = sshll.u32 %s433_s0, 4  ;;  %s34_s19 = int_to_ptr.vmem [resolvable:$true] %s33_s19  ;;  %s19_s22 = int_to_ptr.hbm [resolvable:$true] %s18_s22 }
   0x5   :  { %s336_s23 = smov 128   ;;  %s337_s24 = smov 8  }
   0x6   :  { %39 = dma.hbm_to_vmem [thread:$0]  %s32_s17, 256, %s34_s19, [#allocation6], %s336_s23, %s336_s23, %s337_s24  }
   0x7   :  { %s338_s25 = smov [#allocation2]   ;;  %s44_s1 = sshll.u32 %s435_s2, 4  ;;  %s45_s1 = int_to_ptr.hbm [resolvable:$true] %s44_s1 }
   0x8   :  { %s20_s26 = sshll.u32 %s338_s25, 4  ;;  %s339_s0 = smov [#allocation7]   ;;  %s21_s26 = int_to_ptr.vmem [resolvable:$true] %s20_s26 }
   0x9   :  { %26 = dma.hbm_to_vmem [thread:$0]  %s19_s22, 2048, %s21_s26, [#allocation3], %s336_s23, %s336_s23, %s337_s24  }
   0xa   :  { %s46_s29 = sshll.u32 %s339_s0, 4  ;;  %s47_s29 = int_to_ptr.vmem [resolvable:$true] %s46_s29 }
   0xb   :  { %52 = dma.hbm_to_vmem [thread:$0]  %s45_s1, 256, %s47_s29, [#allocation6], %s336_s23, %s336_s23, %s337_s24  }
   0xc   :  { %327 = dma.done.wait [#allocation3], 2048  }
   0xd   :  { %328 = vsyncadd [#allocation3], 4294965248 }
   0xe   :  { %329 = dma.done.wait [#allocation6], 512  }
   0xf   :  { %330 = vsyncadd [#allocation6], 4294966784  ;;  %v81_v0 = vlaneseq  ;;  %v65_v3 = vld [vmem:[#allocation2] sm:$0xff]  ;;  %v66_v5 = vld [vmem:[#allocation2 + $0x8] sm:$0xff]  ;;  %s340_s2 = smov [#allocation8]   ;;  %s168_s7 = sshll.u32 %s436_s3, 4  ;;  %s169_s7 = int_to_ptr.hbm [resolvable:$true] %s168_s7 }
  0x10   :  { %v90_v4 = vld [vmem:[#allocation5] sm:$0xff]  ;;  %113 = vst [vmem:[#allocation8 + $0x8] sm:$0xff] %v66_v5  ;;  %v67_v7 = vld [vmem:[#allocation2 + $0x10] sm:$0xff]  ;;  %v68_v10 = vld [vmem:[#allocation2 + $0x18] sm:$0xff]  ;;  %s166_s30 = sshll.u32 %s340_s2, 4  ;;  %s341_s3 = smov [#allocation9]   ;;  %s167_s30 = int_to_ptr.vmem [resolvable:$true] %s166_s30 }
  0x11   :  { %v82_v1 = vshrl.u32 %v81_v0, 7  ;;  %v69_v8 = vld [vmem:[#allocation2 + $0x20] sm:$0xff]  ;;  %147 = vst [vmem:[#allocation9 + $0x8] sm:$0xff] %v66_v5  ;;  %v71_v12 = vld [vmem:[#allocation2 + $0x30] sm:$0xff]  ;;  %v70_v13 = vld [vmem:[#allocation2 + $0x28] sm:$0xff]  ;;  %s179_s8 = sshll.u32 %s341_s3, 4  ;;  %s180_s8 = int_to_ptr.vmem [resolvable:$true] %s179_s8 }
  0x12   :  { %115 = vst [vmem:[#allocation8 + $0x18] sm:$0xff] %v68_v10  ;;  %v73_v15 = vld [vmem:[#allocation2 + $0x40] sm:$0xff]  ;;  %v72_v16 = vld [vmem:[#allocation2 + $0x38] sm:$0xff]  ;;  %v75_v18 = vld [vmem:[#allocation2 + $0x50] sm:$0xff]  ;;  %s181_s11 = sshll.u32 %s437_s4, 4  ;;  %s182_s11 = int_to_ptr.hbm [resolvable:$true] %s181_s11 }
  0x13   :  { %vm84_vm0 = vcmp.ge.s32.totalorder %v82_v1, 1  ;;  %vm86_vm1 = vcmp.lt.s32.totalorder %v82_v1, 5  ;;  %149 = vst [vmem:[#allocation9 + $0x18] sm:$0xff] %v68_v10  ;;  %v74_v19 = vld [vmem:[#allocation2 + $0x48] sm:$0xff]  ;;  %v77_v21 = vld [vmem:[#allocation2 + $0x60] sm:$0xff]  ;;  %v76_v22 = vld [vmem:[#allocation2 + $0x58] sm:$0xff] }
  0x14   :  { %vm385_vm2 = vmand %vm84_vm0, %vm86_vm1  ;;  %117 = vst [vmem:[#allocation8 + $0x28] sm:$0xff] %v70_v13  ;;  %v79_v24 = vld [vmem:[#allocation2 + $0x70] sm:$0xff]  ;;  %v78_v25 = vld [vmem:[#allocation2 + $0x68] sm:$0xff] }
  0x15   :  { %v96_v6 = vsel %vm385_vm2, %v90_v4, %v65_v3  ;;  %v98_v9 = vsel %vm385_vm2, %v90_v4, %v67_v7  ;;  %v100_v11 = vsel %vm385_vm2, %v90_v4, %v69_v8  ;;  %v102_v14 = vsel %vm385_vm2, %v90_v4, %v71_v12  ;;  %151 = vst [vmem:[#allocation9 + $0x28] sm:$0xff] %v70_v13  ;;  %v128_v27 = vld [vmem:[#allocation7] sm:$0xff]  ;;  %v80_v28 = vld [vmem:[#allocation2 + $0x78] sm:$0xff] }
  0x16   :  { %112 = vst [vmem:[#allocation8] sm:$0xff] %v96_v6  ;;  %v104_v17 = vsel %vm385_vm2, %v90_v4, %v73_v15  ;;  %v106_v20 = vsel %vm385_vm2, %v90_v4, %v75_v18  ;;  %v108_v23 = vsel %vm385_vm2, %v90_v4, %v77_v21  ;;  %v110_v26 = vsel %vm385_vm2, %v90_v4, %v79_v24 }
  0x17   :  { %114 = vst [vmem:[#allocation8 + $0x10] sm:$0xff] %v98_v9  ;;  %v130_v29 = vsel %vm385_vm2, %v128_v27, %v65_v3  ;;  %v132_v30 = vsel %vm385_vm2, %v128_v27, %v67_v7  ;;  %v134_v31 = vsel %vm385_vm2, %v128_v27, %v69_v8  ;;  %v136_v32 = vsel %vm385_vm2, %v128_v27, %v71_v12 }
  0x18   :  { %116 = vst [vmem:[#allocation8 + $0x20] sm:$0xff] %v100_v11  ;;  %v138_v33 = vsel %vm385_vm2, %v128_v27, %v73_v15  ;;  %v140_v34 = vsel %vm385_vm2, %v128_v27, %v75_v18  ;;  %v142_v35 = vsel %vm385_vm2, %v128_v27, %v77_v21  ;;  %v144_v36 = vsel %vm385_vm2, %v128_v27, %v79_v24 }
  0x19   :  { %118 = vst [vmem:[#allocation8 + $0x30] sm:$0xff] %v102_v14 }
  0x1a   :  { %119 = vst [vmem:[#allocation8 + $0x38] sm:$0xff] %v72_v16 }
  0x1b   :  { %153 = vst [vmem:[#allocation9 + $0x38] sm:$0xff] %v72_v16 }
  0x1c   :  { %120 = vst [vmem:[#allocation8 + $0x40] sm:$0xff] %v104_v17 }
  0x1d   :  { %121 = vst [vmem:[#allocation8 + $0x48] sm:$0xff] %v74_v19 }
  0x1e   :  { %155 = vst [vmem:[#allocation9 + $0x48] sm:$0xff] %v74_v19 }
  0x1f   :  { %122 = vst [vmem:[#allocation8 + $0x50] sm:$0xff] %v106_v20 }
  0x20   :  { %123 = vst [vmem:[#allocation8 + $0x58] sm:$0xff] %v76_v22 }
  0x21   :  { %157 = vst [vmem:[#allocation9 + $0x58] sm:$0xff] %v76_v22 }
  0x22   :  { %124 = vst [vmem:[#allocation8 + $0x60] sm:$0xff] %v108_v23 }
  0x23   :  { %125 = vst [vmem:[#allocation8 + $0x68] sm:$0xff] %v78_v25 }
  0x24   :  { %159 = vst [vmem:[#allocation9 + $0x68] sm:$0xff] %v78_v25 }
  0x25   :  { %126 = vst [vmem:[#allocation8 + $0x70] sm:$0xff] %v110_v26 }
  0x26   :  { %127 = vst [vmem:[#allocation8 + $0x78] sm:$0xff] %v80_v28 }
  0x27   :  { %161 = vst [vmem:[#allocation9 + $0x78] sm:$0xff] %v80_v28  ;;  %174 = dma.vmem_to_hbm [thread:$0]  %s167_s30, 2048, %s169_s7, [#allocation4], %s336_s23, %s336_s23, %s337_s24  }
  0x28   :  { %146 = vst [vmem:[#allocation9] sm:$0xff] %v130_v29 }
  0x29   :  { %148 = vst [vmem:[#allocation9 + $0x10] sm:$0xff] %v132_v30 }
  0x2a   :  { %150 = vst [vmem:[#allocation9 + $0x20] sm:$0xff] %v134_v31 }
  0x2b   :  { %152 = vst [vmem:[#allocation9 + $0x30] sm:$0xff] %v136_v32 }
  0x2c   :  { %154 = vst [vmem:[#allocation9 + $0x40] sm:$0xff] %v138_v33 }
  0x2d   :  { %156 = vst [vmem:[#allocation9 + $0x50] sm:$0xff] %v140_v34 }
  0x2e   :  { %158 = vst [vmem:[#allocation9 + $0x60] sm:$0xff] %v142_v35 }
  0x2f   :  { %160 = vst [vmem:[#allocation9 + $0x70] sm:$0xff] %v144_v36 }
  0x30   :  { %187 = dma.vmem_to_hbm [thread:$0]  %s180_s8, 2048, %s182_s11, [#allocation10], %s336_s23, %s336_s23, %s337_s24  }
  0x31   :  { %331 = dma.done.wait [#allocation4], 2048  }
  0x32   :  { %332 = vsyncadd [#allocation4], 4294965248 }
  0x33   :  { %333 = dma.done.wait [#allocation10], 2048  }
  0x34   :  { %334 = vsyncadd [#allocation10], 4294965248 }
  0x35   :  { %196 = vsyncpa [#allocation3], 1 }
  0x36   :  { %197 = vsyncpa [#allocation6], 1 }
  0x37   :  { %198 = vsyncpa [#allocation4], 1 }
  0x38   :  { %199 = vsyncpa [#allocation10], 1 }

</bundles_post_ra>
